<compile_context>
chip_gen: v7x
topology: tpu7x:2x2x1
jax: 0.10.0
libtpu: 0.0.40
codegen_flags: <defaults>
</compile_context>

<pallas_src>
import jax
import jax.numpy as jnp
from jax.experimental import pallas as pl
from jax.experimental.pallas import tpu as pltpu


def _make_fusion_kernel(merged, use_ref):
    def kernel(*refs):
        it = iter(refs)
        sp_ref = next(it)            # (TB, C1, THW)   spatial_features tile
        seg_ref = next(it)           # (TB, C2, THW)   seg_features tile
        if merged:
            eff_ref = next(it)       # (TB, Cout, Cin) per-batch folded conv weight
        else:
            eff_sp_ref = next(it)    # (TB, Cout, C1)
            eff_seg_ref = next(it)   # (TB, Cout, C2)
        bias_ref = next(it)          # (1, Cout)
        if use_ref:
            empty_ref = next(it)     # (TB, Cout, THW) empty_features tile
        o_ref = next(it)             # (TB, Cout, THW)

        sp = sp_ref[...]             # native dtype -- no full-tile f32 upcast
        seg = seg_ref[...]

        if merged:
            # one K=Cin contraction over a VMEM-local concat (never hits HBM)
            x = jnp.concatenate([sp, seg], axis=1)               # (TB, Cin, THW)
            out = jnp.einsum('boc,bcp->bop', eff_ref[...], x,
                             preferred_element_type=jnp.float32)
        else:
            out = jnp.einsum('boc,bcp->bop', eff_sp_ref[...], sp,
                             preferred_element_type=jnp.float32)
            out = out + jnp.einsum('boc,bcp->bop', eff_seg_ref[...], seg,
                                   preferred_element_type=jnp.float32)

        out = out + bias_ref[...].astype(jnp.float32)[:, :, None]
        if use_ref:
            out = out + empty_ref[...].astype(jnp.float32)
        o_ref[...] = out.astype(o_ref.dtype)

    return kernel


def _choose_blocks(batch, hwp, c1, c2, c_out, itemsize, use_ref,
                   budget_bytes=24 << 20, max_thw=8192):
    """Pick (batch tile, spatial tile).  The per-step estimate counts the
    double-buffered input/output blocks, the in-kernel concat copy and the f32
    output accumulation, and stays well inside the explicit 48 MiB scoped-VMEM
    limit (safe for v7x's 64 MiB physical VMEM and v5e's 16 MiB default)."""
    c_in = c1 + c2
    big_ch = c1 + c2 + (c_out if use_ref else 0)
    per_lane = (2 * (big_ch + c_out) * itemsize   # double-buffered in/out blocks
                + c_in * itemsize                 # VMEM concat copy of the tile
                + c_out * 4)                      # f32 accumulation of the output
    max_lanes = max(128, min(max_thw, budget_bytes // max(per_lane, 1)))

    # largest 128-multiple divisor of the (padded) spatial axis that fits
    n = hwp // 128
    d_best = 1
    for d in range(1, n + 1):
        if n % d == 0 and 128 * d <= max_lanes:
            d_best = d
    thw = 128 * d_best

    # Coarsen over batch only when the whole spatial axis already fits in one
    # tile (small images); otherwise spatial tiles provide the parallel work.
    tb = 1
    if thw == hwp and batch > 1:
        per_batch = per_lane * hwp
        tb = max(1, min(batch, budget_bytes // max(per_batch, 1)))
        tb = min(tb, (batch + 1) // 2)   # keep >=2 grid steps for v7x's 2 TCs
        while batch % tb:
            tb -= 1
    return tb, thw


def fusion_layer_pallas(spatial, seg, conv_w, conv_b, w1=None, w2=None,
                        empty=None, *, use_attn=True):
    """Fusion_Layer forward.

    spatial: (B, C1, H, W)   batch_dict['spatial_features']
    seg:     (B, C2, H, W)   batch_dict['seg_features']
    conv_w:  (Cout, C1+C2)   1x1-conv weight (PyTorch (Cout, Cin, 1, 1) squeezed)
    conv_b:  (Cout,)         1x1-conv bias
    w1:      (hidden, Cin)   SE first Linear weight  (PyTorch layout, no bias)
    w2:      (Cin, hidden)   SE second Linear weight (PyTorch layout, no bias)
    empty:   (B, Cout, H, W) batch_dict['empty_features'] or None
    """
    B, C1, H, W = spatial.shape
    C2 = seg.shape[1]
    Cin = C1 + C2
    Cout = conv_w.shape[0]
    HW = H * W
    HWp = ((HW + 127) // 128) * 128
    use_ref = empty is not None
    x_dtype = spatial.dtype
    itemsize = jnp.dtype(x_dtype).itemsize

    # --- tiny SE pre-pass (plain XLA), folded into per-batch conv weights ----
    wc = conv_w.astype(jnp.float32)                                    # (Cout, Cin)
    if use_attn:
        pooled = jnp.concatenate(
            [jnp.mean(spatial.astype(jnp.float32), axis=(2, 3)),
             jnp.mean(seg.astype(jnp.float32), axis=(2, 3))], axis=1)  # (B, Cin)
        h = jnp.maximum(pooled @ w1.astype(jnp.float32).T, 0.0)        # (B, hidden)
        y = jax.nn.sigmoid(h @ w2.astype(jnp.float32).T)               # (B, Cin)
        eff = wc[None, :, :] * y[:, None, :]                           # (B, Cout, Cin)
    else:
        eff = jnp.broadcast_to(wc[None, :, :], (B, Cout, Cin))
    eff = eff.astype(x_dtype)
    # TODO(synk): for bf16 activations the folded eff weight is rounded to bf16
    # before the MXU, a slightly different rounding than scaling activations in f32.

    # --- flatten; pad only if H*W is not already 128-aligned -----------------
    def flat_pad(a):
        a = a.reshape(a.shape[0], a.shape[1], HW)
        if HWp != HW:
            # TODO(synk): a masked edge store would avoid this extra HBM pass;
            # typical pcdet BEV grids (200x176, 496x432) are already 128-aligned.
            a = jnp.pad(a, ((0, 0), (0, 0), (0, HWp - HW)))
        return a

    sp_f = flat_pad(spatial)
    seg_f = flat_pad(seg)

    tb, thw = _choose_blocks(B, HWp, C1, C2, Cout, itemsize, use_ref)
    grid = (B // tb, HWp // thw)

    merged = (C1 % 8 == 0) and (C2 % 8 == 0)   # sublane-aligned in-kernel concat

    def big_spec(c):
        return pl.BlockSpec((tb, c, thw), lambda b, s: (b, 0, s))

    def per_batch_spec(r, c):
        return pl.BlockSpec((tb, r, c), lambda b, s: (b, 0, 0))

    args = [sp_f, seg_f]
    in_specs = [big_spec(C1), big_spec(C2)]
    if merged:
        args.append(eff)
        in_specs.append(per_batch_spec(Cout, Cin))
    else:
        args += [eff[:, :, :C1], eff[:, :, C1:]]
        in_specs += [per_batch_spec(Cout, C1), per_batch_spec(Cout, C2)]
    args.append(conv_b.reshape(1, Cout).astype(jnp.float32))
    in_specs.append(pl.BlockSpec((1, Cout), lambda b, s: (0, 0)))
    if use_ref:
        args.append(flat_pad(empty))
        in_specs.append(big_spec(Cout))

    # Advisory cost estimate: the kernel is HBM-bandwidth bound.
    bytes_accessed = (sp_f.size + seg_f.size
                      + B * Cout * HWp * (2 if use_ref else 1)) * itemsize
    flops = 2 * B * HWp * Cin * Cout + B * Cout * HWp * (2 if use_ref else 1)

    kernel = _make_fusion_kernel(merged, use_ref)

    out_flat = pl.pallas_call(
        kernel,
        out_shape=jax.ShapeDtypeStruct((B, Cout, HWp), x_dtype),
        grid_spec=pltpu.PrefetchScalarGridSpec(
            num_scalar_prefetch=0,
            grid=grid,
            in_specs=in_specs,
            out_specs=pl.BlockSpec((tb, Cout, thw), lambda b, s: (b, 0, s)),
        ),
        compiler_params=pltpu.CompilerParams(
            dimension_semantics=("parallel", "parallel"),
            vmem_limit_bytes=48 << 20,
        ),
        # NOTE: pipeline_mode=pl.Buffered(3) on the big specs is worth sweeping on
        # v7x when THW blocks come out small; default double-buffering kept here.
        cost_estimate=pl.CostEstimate(flops=int(flops), transcendentals=0,
                                      bytes_accessed=int(bytes_accessed)),
    )(*args)

    out = out_flat
    if HWp != HW:
        out = out[:, :, :HW]
    return out.reshape(B, Cout, H, W)
    # TODO(synk): the batch_dict plumbing of the PyTorch module is trivial Python
    # (dict read/write) and is intentionally left outside the kernel.


def fusion_layer_ref(spatial, seg, conv_w, conv_b, w1=None, w2=None,
                     empty=None, *, use_attn=True):
    """Pure-JAX reference matching the PyTorch Fusion_Layer forward."""
    x = jnp.concatenate([spatial, seg], axis=1).astype(jnp.float32)
    if use_attn:
        pooled = jnp.mean(x, axis=(2, 3))                         # (B, Cin)
        h = jnp.maximum(pooled @ w1.astype(jnp.float32).T, 0.0)   # (B, hidden)
        y = jax.nn.sigmoid(h @ w2.astype(jnp.float32).T)          # (B, Cin)
        x = x * y[:, :, None, None]
    out = jnp.einsum('oc,bchw->bohw', conv_w.astype(jnp.float32), x)
    out = out + conv_b.astype(jnp.float32)[None, :, None, None]
    if empty is not None:
        out = out + empty.astype(jnp.float32)
    return out.astype(spatial.dtype)


if __name__ == "__main__":
    # Fusion_Layer(in_channels=32, out_channels=32, use_attn=True, use_reference_pts=True)
    # se_block(channel=32, ratio=16) -> hidden = 2
    B, C1, C2, H, W = 2, 16, 16, 16, 16
    Cin = C1 + C2
    Cout = 32
    ratio = 16
    hidden = Cin // ratio

    key = jax.random.PRNGKey(0)
    ks = jax.random.split(key, 7)
    spatial = jax.random.normal(ks[0], (B, C1, H, W), dtype=jnp.float32)
    seg = jax.random.normal(ks[1], (B, C2, H, W), dtype=jnp.float32)
    empty = jax.random.normal(ks[2], (B, Cout, H, W), dtype=jnp.float32)
    # PyTorch weight layouts: Linear (out, in); Conv2d 1x1 squeezed to (out, in).
    w1 = jax.random.normal(ks[3], (hidden, Cin), dtype=jnp.float32) * (1.0 / (Cin ** 0.5))
    w2 = jax.random.normal(ks[4], (Cin, hidden), dtype=jnp.float32) * (1.0 / (hidden ** 0.5))
    conv_w = jax.random.normal(ks[5], (Cout, Cin), dtype=jnp.float32) * (1.0 / (Cin ** 0.5))
    conv_b = jax.random.normal(ks[6], (Cout,), dtype=jnp.float32) * 0.1

    # use_attn=True, use_reference_pts=True
    out = fusion_layer_pallas(spatial, seg, conv_w, conv_b, w1, w2, empty, use_attn=True)
    out = jax.block_until_ready(out)
    ref = fusion_layer_ref(spatial, seg, conv_w, conv_b, w1, w2, empty, use_attn=True)
    assert out.shape == (B, Cout, H, W)
    assert jnp.allclose(out, ref, atol=2e-4, rtol=2e-4), \
        float(jnp.max(jnp.abs(out - ref)))

    # use_attn=False, use_reference_pts=False
    out2 = fusion_layer_pallas(spatial, seg, conv_w, conv_b, use_attn=False)
    out2 = jax.block_until_ready(out2)
    ref2 = fusion_layer_ref(spatial, seg, conv_w, conv_b, use_attn=False)
    assert jnp.allclose(out2, ref2, atol=2e-4, rtol=2e-4), \
        float(jnp.max(jnp.abs(out2 - ref2)))

    print("KERNEL_OK")
</pallas_src>

<mosaic_0001>
module attributes {stable_mosaic.version = 11 : i64} {
  func.func @kernel(%arg0: i32, %arg1: i32, %arg2: memref<1x16x256xf32, #tpu.memory_space<vmem>>, %arg3: memref<1x16x256xf32, #tpu.memory_space<vmem>>, %arg4: memref<1x32x32xf32, #tpu.memory_space<vmem>>, %arg5: memref<1x32xf32, #tpu.memory_space<vmem>>, %arg6: memref<1x32x256xf32, #tpu.memory_space<vmem>>, %arg7: memref<1x32x256xf32, #tpu.memory_space<vmem>>) attributes {dimension_semantics = [#tpu.dimension_semantics<parallel>, #tpu.dimension_semantics<parallel>], iteration_bounds = array<i64: 2, 1>, scalar_prefetch = 0 : i64, scratch_operands = 0 : i64, tpu.core_type = #tpu.core_type<tc>, window_params = [{transform_indices = @transform_0, window_bounds = array<i64: 1, 16, 256>}, {transform_indices = @transform_1, window_bounds = array<i64: 1, 16, 256>}, {transform_indices = @transform_2, window_bounds = array<i64: 1, 32, 32>}, {pipeline_mode = #tpu.pipeline_mode<synchronous>, transform_indices = @transform_3, window_bounds = array<i64: 1, 32>}, {transform_indices = @transform_4, window_bounds = array<i64: 1, 32, 256>}, {transform_indices = @transform_5, window_bounds = array<i64: 1, 32, 256>}]} {
    %c0 = arith.constant 0 : index
    %c0_0 = arith.constant 0 : index
    %c0_1 = arith.constant 0 : index
    %0 = vector.load %arg2[%c0, %c0_0, %c0_1] : memref<1x16x256xf32, #tpu.memory_space<vmem>>, vector<1x16x256xf32>
    %c0_2 = arith.constant 0 : index
    %c0_3 = arith.constant 0 : index
    %c0_4 = arith.constant 0 : index
    %1 = vector.load %arg3[%c0_2, %c0_3, %c0_4] : memref<1x16x256xf32, #tpu.memory_space<vmem>>, vector<1x16x256xf32>
    %2 = tpu.concatenate %0, %1 in 1 : vector<1x16x256xf32>, vector<1x16x256xf32> -> vector<1x32x256xf32>
    %c0_5 = arith.constant 0 : index
    %c0_6 = arith.constant 0 : index
    %c0_7 = arith.constant 0 : index
    %3 = vector.load %arg4[%c0_5, %c0_6, %c0_7] : memref<1x32x32xf32, #tpu.memory_space<vmem>>, vector<1x32x32xf32>
    "tpu.trace_start"() <{level = 10 : i32, message = "boc,bcp->bop"}> : () -> ()
    %cst = arith.constant dense<0.000000e+00> : vector<1x32x256xf32>
    %4 = tpu.matmul %3, %2, %cst {dimension_numbers = #tpu.dot_dimension_numbers<[2], [1], [1], [2], [0, 0, 0, 1, 1, 2], [0], [0]>} : vector<1x32x32xf32>, vector<1x32x256xf32>, vector<1x32x256xf32> -> vector<1x32x256xf32>
    "tpu.trace_stop"() : () -> ()
    %c0_8 = arith.constant 0 : index
    %c0_9 = arith.constant 0 : index
    %5 = vector.load %arg5[%c0_8, %c0_9] : memref<1x32xf32, #tpu.memory_space<vmem>>, vector<1x32xf32>
    %6 = vector.shape_cast %5 : vector<1x32xf32> to vector<1x32x1xf32>
    %7 = vector.broadcast %6 : vector<1x32x1xf32> to vector<1x32x256xf32>
    %8 = arith.addf %4, %7 : vector<1x32x256xf32>
    %c0_10 = arith.constant 0 : index
    %c0_11 = arith.constant 0 : index
    %c0_12 = arith.constant 0 : index
    %9 = vector.load %arg6[%c0_10, %c0_11, %c0_12] : memref<1x32x256xf32, #tpu.memory_space<vmem>>, vector<1x32x256xf32>
    %10 = arith.addf %8, %9 : vector<1x32x256xf32>
    %c0_13 = arith.constant 0 : index
    %c0_14 = arith.constant 0 : index
    %c0_15 = arith.constant 0 : index
    %11 = vector.load %arg7[%c0_13, %c0_14, %c0_15] : memref<1x32x256xf32, #tpu.memory_space<vmem>>, vector<1x32x256xf32>
    tpu.vector_store %arg7[%c0_13, %c0_14, %c0_15], %10 {strides = array<i32>} : memref<1x32x256xf32, #tpu.memory_space<vmem>>, vector<1x32x256xf32>,
    return
  }
  func.func @transform_0(%arg0: i32, %arg1: i32) -> (i32, i32, i32) {
    %c0_i32 = arith.constant 0 : i32
    %c0_i32_0 = arith.constant 0 : i32
    return %arg0, %c0_i32, %arg1 : i32, i32, i32
  }
  func.func @transform_1(%arg0: i32, %arg1: i32) -> (i32, i32, i32) {
    %c0_i32 = arith.constant 0 : i32
    %c0_i32_0 = arith.constant 0 : i32
    return %arg0, %c0_i32, %arg1 : i32, i32, i32
  }
  func.func @transform_2(%arg0: i32, %arg1: i32) -> (i32, i32, i32) {
    %c0_i32 = arith.constant 0 : i32
    %c0_i32_0 = arith.constant 0 : i32
    %c0_i32_1 = arith.constant 0 : i32
    return %arg0, %c0_i32, %c0_i32_0 : i32, i32, i32
  }
  func.func @transform_3(%arg0: i32, %arg1: i32) -> (i32, i32) {
    %c0_i32 = arith.constant 0 : i32
    %c0_i32_0 = arith.constant 0 : i32
    %c0_i32_1 = arith.constant 0 : i32
    return %c0_i32, %c0_i32_0 : i32, i32
  }
  func.func @transform_4(%arg0: i32, %arg1: i32) -> (i32, i32, i32) {
    %c0_i32 = arith.constant 0 : i32
    %c0_i32_0 = arith.constant 0 : i32
    return %arg0, %c0_i32, %arg1 : i32, i32, i32
  }
  func.func @transform_5(%arg0: i32, %arg1: i32) -> (i32, i32, i32) {
    %c0_i32 = arith.constant 0 : i32
    %c0_i32_0 = arith.constant 0 : i32
    return %arg0, %c0_i32, %arg1 : i32, i32, i32
  }
}

</mosaic_0001>

<bundles_post_ra>
// kernel: tpu_custom_call.1
= control target key start
LH: loop header
LB: loop body
LE: loop exit
PB: predicated region body
PF: predicated region fallthrough
CT: control target
= control target key end

     0   :  { %s1460_s0 = inlined_call_operand.hbm [shape: f32[2,16,256], index: 0, kind: input, shape index: {}]   ;;  %s1461_s1 = inlined_call_operand.hbm [shape: f32[2,16,256], index: 1, kind: input, shape index: {}]   ;;  %s1462_s2 = inlined_call_operand.hbm [shape: f32[2,32,32], index: 2, kind: input, shape index: {}]   ;;  %s1463_s3 = inlined_call_operand.vmem [shape: f32[1,32], index: 3, kind: input, shape index: {}]   ;;  %s1464_s4 = inlined_call_operand.hbm [shape: f32[2,32,256], index: 4, kind: input, shape index: {}]   ;;  %s1465_s5 = inlined_call_operand.hbm [shape: f32[2,32,256], index: 5, kind: output, shape index: {}]  }
   0x1   :  { %1478 = sst [smem:[#allocation21_spill]] %s1461_s1 }
   0x2   :  { %10 = vsyncpa [#allocation3], 0 }
   0x3   :  { %12 = vsyncpa [#allocation3 + $0x1], 0 }
   0x4   :  { %13 = vsyncpa [#allocation6], 0 }
   0x5   :  { %15 = vsyncpa [#allocation6 + $0x1], 0 }
   0x6   :  { %16 = vsyncpa [#allocation9], 0 }
   0x7   :  { %18 = vsyncpa [#allocation9 + $0x1], 0 }
   0x8   :  { %19 = vsyncpa [#allocation4], 0 }
   0x9   :  { %21 = vsyncpa [#allocation4 + $0x1], 0  ;;  %s1110_s18 = smov 0   ;;  %s1112_s19 = smov 0  }
   0xa   :  { %s1114_s20 = smov 0   ;;  %s1116_s21 = smov 0  }
   0xb   :  { %s1118_s22 = smov 0   ;;  %s1120_s23 = smov 0  }
   0xc LB: > { %1479 = sst [smem:[#allocation15_spill]] %s1046_s18  ;;  %s1141_s24 = sadd.s32 4294967295, %s1066_s23   ;;  %s1066_s23 = sphi %s1120_s23, %s27_s23   ;;  %s1062_s22 = sphi %s1118_s22, %s1511_s22   ;;  %s1058_s21 = sphi %s1116_s21, %s1510_s21   ;;  %s1054_s20 = sphi %s1114_s20, %s1506_s20   ;;  %s1050_s19 = sphi %s1112_s19, %s1509_s19   ;;  %s1046_s18 = sphi %s1110_s18, %s1508_s18  }
   0xd   : > { %1480 = sst [smem:[#allocation16_spill]] %s1054_s20  ;;  %s724_s25 = sadd.s32 4294967294, %s1066_s23  }
   0xe   : > { %1481 = sst [smem:[#allocation17_spill]] %s1066_s23  ;;  %s39_s26 = sadd.s32 1, %s1062_s22 }
   0xf   : > { %s48_s27 = sadd.s32 1, %s1054_s20  ;;  %p41_p0 = scmp.ge.s32.totalorder %s39_s26, 2 }
  0x10   : > { %p55_p1 = scmp.ne.s32.totalorder %s1054_s20, %s1050_s19  ;;  %p56_p2 = scmp.eq.s32.totalorder %s1066_s23, 0 }
  0x11   : > { %p61_p3 = scmp.ne.s32.totalorder %s1050_s19, %s1046_s18  ;;  %s1513_s26 = smov (%p41_p0, %s39_s26), 0 }
  0x12   : > { %1482 = sst [smem:[#allocation18_spill]] %s1513_s26  ;;  %p1153_p4 = por %p56_p2, %p55_p1 }
  0x13   : > { %p62_p5 = scmp.eq.s32.totalorder %s1141_s24, 0  ;;  %s43_s29 = ssub.s32 %s1062_s22, %s1513_s26 }
  0x14   : > { %p190_p6 = scmp.eq.s32.totalorder %s1141_s24, 1  ;;  %p46_p7 = scmp.eq.s32.totalorder %s43_s29, 0 }
  0x15   : > { %p1161_p8 = por %p62_p5, %p61_p3  ;;  %p196_p10 = scmp.eq.s32.totalorder %s724_s25, 1 }
  0x16   : > { %p1165_p9 = por %p190_p6, %p55_p1  ;;  %p799_p13 = scmp.lt.s32.totalorder %s1066_s23, 2 }
  0x17   : > { %s1484_s30 = scalar_select %p1161_p8, 1, 0 }
  0x18   : > { %s1485_s6 = scalar_select %p1165_p9, 1, 0 }
  0x19   : > { %s1170_s7 = scalar_select %p46_p7, %s1054_s20, %s48_s27  }
  0x1a   : > { %p1172_p11 = por %p196_p10, %p61_p3  ;;  %s1179_s9 = sand.u32 1, %s1054_s20  }
  0x1b   : > { %1486 = sst [smem:[#allocation19_spill]] %s1170_s7  ;;  %s1182_s10 = sshll.u32 %s1179_s9, 5 }
  0x1c   : > { %s1487_s8 = scalar_select %p1172_p11, 1, 0 }
  0x1d   : > { %s1185_s11 = sshll.u32 %s1062_s22, 9  ;;  %p1189_p0 = pnand %p799_p13, %p1153_p4 }
  0x1e   : > { %1488 = sst [smem:[#allocation20_spill]] %s1487_s8  ;;  %s242_s13 = sand.u32 1, %s1066_s23  }
  0x1f   : > { %s1490_s1 = sld [smem:[#allocation21_spill]]  ;;  %s246_s17 = scalar_lea.vmem [#allocation5], %s1182_s10 }
  0x20   : > { %s255_s25 = sshll.u32 %s246_s17, 4  ;;  %s1205_s27 = scalar_lea.sflag [#allocation6], %s242_s13  ;;  %s1202_s25 = int_to_ptr.vmem [resolvable:$true] %s255_s25 }
  0x21   : > { %p1211_p4 = pneg %p1189_p0 }
  0x25   : > { %s1198_s16 = scalar_lea.hbm %s1490_s1, %s1185_s11  ;;  %s861_s17 = scalar_lea.hbm %s1490_s1, 1024 }
  0x26   : > { %s856_s28 = scalar_lea.hbm %s1198_s16, 512  ;;  %p862_p7 = scmp.lt.u32.totalorder %s1198_s16, %s1490_s1 }
  0x27   : > { %p857_p3 = scmp.ne.s32.totalorder %s1198_s16, %s856_s28  ;;  %p863_p10 = scmp.lt.u32.totalorder %s861_s17, %s856_s28 }
  0x28   : > { %p865_p12 = scmp.lt.u32.totalorder %s856_s28, %s1198_s16 }
  0x29   : > { %p859_p5 = pnand %p1211_p4, %p857_p3  ;;  %p864_p13 = por %p863_p10, %p862_p7 }
  0x2b   : > { %p860_p6 = pneg %p859_p5  ;;  %p866_p1 = por %p865_p12, %p864_p13 }
  0x2d   : > { %p867_p2 = pnand %p866_p1, %p860_p6 }
  0x2f   : > { %870 = shalt.err (!%p867_p2)
}
  0x30   : > { %s871_s13 = scalar_lea.vmem %s1202_s25, 512  ;;  %s1068_s14 = smov [#allocation5]  }
  0x31   : > { %p872_p3 = scmp.ne.s32.totalorder %s1202_s25, %s871_s13  ;;  %s876_s15 = sshll.u32 %s1068_s14, 4  ;;  %s877_s15 = int_to_ptr.vmem [resolvable:$false] %s876_s15 }
  0x32   : > { %s878_s26 = scalar_lea.vmem %s877_s15, 1024  ;;  %p879_p9 = scmp.lt.s32.totalorder %s1202_s25, %s877_s15 }
  0x33   : > { %p874_p5 = pnand %p872_p3, %p1211_p4  ;;  %p880_p8 = scmp.lt.s32.totalorder %s878_s26, %s871_s13 }
  0x35   : > { %p875_p11 = pneg %p874_p5  ;;  %p881_p7 = por %p880_p8, %p879_p9 }
  0x37   : > { %p882_p10 = pnand %p881_p7, %p875_p11 }
  0x39   : > { %885 = shalt.err (!%p882_p10)
}
  0x3a   : > { %s1469_s7 = smov 256   ;;  %s1471_s28 = smov 16  }
  0x3b   : > { %788 = dma.hbm_to_vmem [thread:$0]  (!%p1189_p0), %s1198_s16, 512, %s1202_s25, %s1205_s27, %s1469_s7, %s1469_s7, %s1471_s28  }
  0x3c   : > { %p1492_p8 = scmp.lt.s32.totalorder %s1066_s23, 3  ;;  %p1493_p9 = scmp.ge.s32.totalorder %s1066_s23, 1 }
  0x3d   : > { %s1250_s15 = scalar_lea.hbm %s1460_s0, %s1185_s11  ;;  %s223_s26 = scalar_lea.vmem [#allocation2], %s1182_s10 }
  0x3e   : > { %p1242_p11 = pnand %p1493_p9, %p1492_p8  ;;  %s232_s1 = sshll.u32 %s223_s26, 4  ;;  %s1253_s1 = int_to_ptr.vmem [resolvable:$true] %s232_s1 }
  0x3f   : > { %s1259_s7 = scalar_lea.hbm %s1462_s2, %s1185_s11  ;;  %s220_s28 = scalar_lea.sflag [#allocation3], %s1179_s9 }
  0x40   : > { %s1494_s17 = scalar_select %p1242_p11, 1, 0 }
  0x41   : > { %s886_s20 = scalar_lea.hbm %s1250_s15, 512  ;;  %s891_s23 = scalar_lea.hbm %s1460_s0, 1024 }
  0x42   : > { %p887_p12 = scmp.ne.s32.totalorder %s1250_s15, %s886_s20  ;;  %p892_p6 = scmp.lt.u32.totalorder %s1250_s15, %s1460_s0 }
  0x43   : > { %p893_p13 = scmp.lt.u32.totalorder %s891_s23, %s886_s20  ;;  %p895_p5 = scmp.lt.u32.totalorder %s886_s20, %s1250_s15 }
  0x44   : > { %p889_p1 = pnand %p887_p12, %p1211_p4 }
  0x45   : > { %p894_p3 = por %p893_p13, %p892_p6 }
  0x46   : > { %p890_p2 = pneg %p889_p1 }
  0x47   : > { %p896_p7 = por %p895_p5, %p894_p3 }
  0x49   : > { %p897_p10 = pnand %p896_p7, %p890_p2 }
  0x4b   : > { %900 = shalt.err (!%p897_p10)
}
  0x4c   : > { %s901_s11 = scalar_lea.vmem %s1253_s1, 512  ;;  %s1071_s26 = smov [#allocation2]  }
  0x4d   : > { %p902_p8 = scmp.ne.s32.totalorder %s1253_s1, %s901_s11  ;;  %s906_s16 = sshll.u32 %s1071_s26, 4  ;;  %s907_s16 = int_to_ptr.vmem [resolvable:$false] %s906_s16 }
  0x4e   : > { %s908_s18 = scalar_lea.vmem %s907_s16, 1024  ;;  %p909_p1 = scmp.lt.s32.totalorder %s1253_s1, %s907_s16 }
  0x4f   : > { %p904_p9 = pnand %p902_p8, %p1211_p4  ;;  %p910_p11 = scmp.lt.s32.totalorder %s908_s18, %s901_s11 }
  0x51   : > { %p905_p12 = pneg %p904_p9  ;;  %p911_p6 = por %p910_p11, %p909_p1 }
  0x53   : > { %p912_p13 = pnand %p911_p6, %p905_p12 }
  0x55   : > { %915 = shalt.err (!%p912_p13)
}
  0x56   : > { %s1495_s20 = smov 16   ;;  %s1496_s23 = smov 256  }
  0x57   : > { %785 = dma.hbm_to_vmem [thread:$0]  (!%p1189_p0), %s1250_s15, 512, %s1253_s1, %s220_s28, %s1496_s23, %s1496_s23, %s1495_s20  }
  0x58   : > { %s269_s8 = scalar_lea.vmem [#allocation7], %s1182_s10  ;;  %s916_s13 = scalar_lea.hbm %s1259_s7, 512 }
  0x59   : > { %s276_s25 = sshll.u32 %s269_s8, 4  ;;  %p917_p11 = scmp.ne.s32.totalorder %s1259_s7, %s916_s13  ;;  %s1289_s25 = int_to_ptr.vmem [resolvable:$true] %s276_s25 }
  0x5a   : > { %s921_s26 = scalar_lea.hbm %s1462_s2, 1024  ;;  %p922_p5 = scmp.lt.u32.totalorder %s1259_s7, %s1462_s2 }
  0x5b   : > { %p919_p2 = pnand %p917_p11, %p1211_p4  ;;  %p923_p7 = scmp.lt.u32.totalorder %s921_s26, %s916_s13 }
  0x5c   : > { %p925_p8 = scmp.lt.u32.totalorder %s916_s13, %s1259_s7 }
  0x5d   : > { %p920_p3 = pneg %p919_p2  ;;  %p924_p10 = por %p923_p7, %p922_p5 }
  0x5f   : > { %p926_p9 = por %p925_p8, %p924_p10 }
  0x61   : > { %p927_p12 = pnand %p926_p9, %p920_p3 }
  0x63   : > { %930 = shalt.err (!%p927_p12)
}
  0x64   : > { %s931_s1 = scalar_lea.vmem %s1289_s25, 512  ;;  %s1072_s10 = smov [#allocation7]  }
  0x65   : > { %p932_p1 = scmp.ne.s32.totalorder %s1289_s25, %s931_s1  ;;  %s936_s28 = sshll.u32 %s1072_s10, 4  ;;  %s937_s28 = int_to_ptr.vmem [resolvable:$false] %s936_s28 }
  0x66   : > { %s938_s15 = scalar_lea.vmem %s937_s28, 1024  ;;  %p939_p11 = scmp.lt.s32.totalorder %s1289_s25, %s937_s28 }
  0x67   : > { %p934_p6 = pnand %p932_p1, %p1211_p4  ;;  %p940_p2 = scmp.lt.s32.totalorder %s938_s15, %s931_s1 }
  0x69   : > { %p935_p13 = pneg %p934_p6  ;;  %p941_p5 = por %p940_p2, %p939_p11 }
  0x6b   : > { %p942_p7 = pnand %p941_p5, %p935_p13 }
  0x6d   : > { %945 = shalt.err (!%p942_p7)
}
  0x6e   : > { %s1073_s8 = smov 128   ;;  %s1074_s13 = smov 8  }
  0x6f   : > { %791 = dma.hbm_to_vmem [thread:$0]  (!%p1189_p0), %s1259_s7, 512, %s1289_s25, %s1205_s27, %s1073_s8, %s1073_s8, %s1074_s13  }
  0x70   : > { %s736_s14 = sshll.u32 %s1179_s9, 6  ;;  %s758_s11 = sshll.u32 %s1062_s22, 10 }
  0x71   : > { %s1318_s18 = scalar_lea.hbm %s1464_s4, %s758_s11  ;;  %s290_s1 = scalar_lea.vmem [#allocation8], %s736_s14 }
  0x72   : > { %s299_s10 = sshll.u32 %s290_s1, 4  ;;  %s287_s28 = scalar_lea.sflag [#allocation9], %s1179_s9  ;;  %s1320_s10 = int_to_ptr.vmem [resolvable:$true] %s299_s10 }
  0x73   : > { %s946_s15 = scalar_lea.hbm %s1318_s18, 1024  ;;  %s951_s25 = scalar_lea.hbm %s1464_s4, 2048 }
  0x74   : > { %p947_p3 = scmp.ne.s32.totalorder %s1318_s18, %s946_s15  ;;  %p952_p9 = scmp.lt.u32.totalorder %s1318_s18, %s1464_s4 }
  0x75   : > { %p953_p12 = scmp.lt.u32.totalorder %s951_s25, %s946_s15  ;;  %p955_p6 = scmp.lt.u32.totalorder %s946_s15, %s1318_s18 }
  0x76   : > { %p949_p10 = pnand %p947_p3, %p1211_p4 }
  0x77   : > { %p954_p1 = por %p953_p12, %p952_p9 }
  0x78   : > { %p950_p8 = pneg %p949_p10 }
  0x79   : > { %p956_p13 = por %p955_p6, %p954_p1 }
  0x7b   : > { %p957_p11 = pnand %p956_p13, %p950_p8 }
  0x7d   : > { %960 = shalt.err (!%p957_p11)
}
  0x7e   : > { %s961_s14 = scalar_lea.vmem %s1320_s10, 1024  ;;  %s1075_s11 = smov [#allocation8]  }
  0x7f   : > { %p962_p2 = scmp.ne.s32.totalorder %s1320_s10, %s961_s14  ;;  %s966_s26 = sshll.u32 %s1075_s11, 4  ;;  %s967_s26 = int_to_ptr.vmem [resolvable:$false] %s966_s26 }
  0x80   : > { %s968_s16 = scalar_lea.vmem %s967_s26, 2048  ;;  %p969_p3 = scmp.lt.s32.totalorder %s1320_s10, %s967_s26 }
  0x81   : > { %p964_p5 = pnand %p962_p2, %p1211_p4  ;;  %p970_p10 = scmp.lt.s32.totalorder %s968_s16, %s961_s14 }
  0x83   : > { %p965_p7 = pneg %p964_p5  ;;  %p971_p9 = por %p970_p10, %p969_p3 }
  0x85   : > { %p972_p12 = pnand %p971_p9, %p965_p7 }
  0x87   : > { %975 = shalt.err (!%p972_p12)
}
  0x88   : > { %794 = dma.hbm_to_vmem [thread:$0]  (!%p1189_p0), %s1318_s18, 1024, %s1320_s10, %s287_s28, %s1496_s23, %s1496_s23, %s1495_s20  }
  0x89   : > { %p1497_p4 = scmp.ne.s32.totalorder %s1494_s17, 0 }
  0x8a   : > { %s1352_s29 = sand.u32 (!%p1497_p4), 1, %s1050_s19   ;;  %p1498_p8 = scmp.ne.s32.totalorder (!%p1497_p4), %s1484_s30, 0 }
  0x8b   : > { %311 = sbr.rel (%p1497_p4) target bundleno = 400 (0x190), region = 40  ;;  %s740_s1 = sshll.u32 (!%p1497_p4), %s1352_s29, 5 }
  0x8c   : > { %s314_s15 = scalar_lea.sflag (!%p1497_p4), [#allocation3], %s1352_s29  ;;  %s317_s12 = scalar_lea.vmem (!%p1497_p4), [#allocation2], %s740_s1 }
  0x92   : > { %1029 = dma.done.wait (%p1498_p8), %s314_s15, 512  }
  0x93   : > { %1031 = vsyncadd (%p1498_p8), %s314_s15, 4294966784  ;;  %s322_s9 = sand.u32 1, %s1141_s24   ;;  %s326_s17 = scalar_lea.vmem [#allocation5], %s740_s1 }
  0x94   : > { %s323_s20 = scalar_lea.sflag [#allocation6], %s322_s9 }
  0x95   : > { %1033 = dma.done.wait (%p1498_p8), %s323_s20, 1024  }
  0x96   : > { %1035 = vsyncadd (%p1498_p8), %s323_s20, 4294966272  ;;  %s743_s23 = sshll.u32 %s1352_s29, 6  ;;  %s1366_s18 = scalar_lea.vmem [#allocation7], %s740_s1 }
  0x97   : > { %s341_s10 = scalar_lea.sflag [#allocation9], %s1352_s29  ;;  %s1371_s28 = scalar_lea.vmem [#allocation8], %s743_s23 }
  0x98   : > { %1037 = dma.done.wait (%p1498_p8), %s341_s10, 1024  }
  0x99   : > { %1039 = vsyncadd (%p1498_p8), %s341_s10, 4294966272  ;;  %v1076_v0 = vmov 0.0   ;;  %v391_v1 = vld [vmem:[%s317_s12 + $0x8] sm:$0xff]  ;;  %v393_v2 = vld [vmem:[%s317_s12 + $0x18] sm:$0xff]  ;;  %vm422_vm0 = vcmask 261120   ;;  %s1390_s27 = scalar_lea.vmem [#allocation10], %s743_s23 }
  0x9a   : > { %499 = vmatprep.mubr.f32.mxu0 %v1076_v0  ;;  %511 = vmatprep.mubr.f32.mxu1 %v1076_v0  ;;  %v390_v3 = vld [vmem:[%s317_s12] sm:$0xff]  ;;  %v760_v4 = vpack.c.bf16 %v393_v2, %v391_v1  ;;  %v392_v5 = vld [vmem:[%s317_s12 + $0x10] sm:$0xff]  ;;  %v395_v6 = vld [vmem:[%s326_s17 + $0x8] sm:$0xff]  ;;  %s564_s7 = sshll.u32 %s1390_s27, 4  ;;  %s759_s25 = sshll.u32 %s1058_s21, 10  ;;  %s1400_s7 = int_to_ptr.vmem [resolvable:$true] %s564_s7 }
  0x9b   : > { %v397_v7 = vld [vmem:[%s326_s17 + $0x18] sm:$0xff]  ;;  %v762_v8 = vpack.c.bf16 %v392_v5, %v390_v3  ;;  %v394_v10 = vld [vmem:[%s326_s17] sm:$0xff]  ;;  %v396_v11 = vld [vmem:[%s326_s17 + $0x10] sm:$0xff]  ;;  %s1407_s13 = scalar_lea.hbm %s1465_s5, %s759_s25  ;;  %s549_s14 = scalar_lea.sflag [#allocation4], %s1352_s29 }
  0x9c   : > { %v764_v9 = vpack.c.bf16 %v397_v7, %v395_v6  ;;  %761 = vmatprep.subr.bf16.mxu0 %v760_v4  ;;  %768 = vmatprep.subr.bf16.mxu1 %v760_v4  ;;  %v766_v12 = vpack.c.bf16 %v396_v11, %v394_v10  ;;  %v745_v13 = vld [vmem:[%s1463_s3] ss:$0 sm:$0xff]  ;;  %v400_v15 = vld [vmem:[%s1366_s18 + $0x10] sm:$0xff]  ;;  %v399_v16 = vld [vmem:[%s1366_s18 + $0x8] sm:$0xff]  ;;  %s976_s11 = scalar_lea.vmem %s1400_s7, 1024  ;;  %p1499_p1 = scmp.ne.s32.totalorder %s1485_s6, 0 }
  0x9d   : > { %763 = vmatpush1.bf16.msra.mxu0 %v762_v8  ;;  %770 = vmatpush1.bf16.msra.mxu1 %v762_v8  ;;  %v398_v14 = vld [vmem:[%s1366_s18] sm:$0xff]  ;;  %v401_v17 = vld [vmem:[%s1366_s18 + $0x18] sm:$0xff]  ;;  %v525_v27 = vld [vmem:[%s1371_s28 + $0x8] sm:$0xff]  ;;  %p977_p0 = scmp.ne.s32.totalorder %s1400_s7, %s976_s11  ;;  %s1077_s26 = smov [#allocation10]  }
  0x9e   : > { %765 = vmatprep.subr.bf16.mxu0 %v764_v9  ;;  %769 = vmatprep.subr.bf16.mxu1 %v764_v9  ;;  %v524_v21 = vld [vmem:[%s1371_s28] sm:$0xff]  ;;  %v529_v29 = vld [vmem:[%s1371_s28 + $0x28] sm:$0xff]  ;;  %v526_v39 = vld [vmem:[%s1371_s28 + $0x10] sm:$0xff]  ;;  %s980_s16 = sshll.u32 %s1077_s26, 4  ;;  %s981_s16 = int_to_ptr.vmem [resolvable:$false] %s980_s16 }
  0x9f   : > { %416 = vbcast.lane.b32.xlu1 %v745_v13, 272  ;;  %408 = vbcast.lane.b32.xlu0 %v745_v13, 256  ;;  %v528_v23 = vld [vmem:[%s1371_s28 + $0x20] sm:$0xff]  ;;  %v530_v41 = vld [vmem:[%s1371_s28 + $0x30] sm:$0xff]  ;;  %v527_v45 = vld [vmem:[%s1371_s28 + $0x18] sm:$0xff]  ;;  %p978_p6 = pnand %p977_p0, %p1499_p1  ;;  %s982_s1 = scalar_lea.vmem %s981_s16, 2048 }
  0xa0   : > { %v531_v47 = vld [vmem:[%s1371_s28 + $0x38] sm:$0xff]  ;;  %p983_p11 = scmp.lt.s32.totalorder %s1400_s7, %s981_s16  ;;  %p984_p2 = scmp.lt.s32.totalorder %s982_s1, %s976_s11 }
  0xa1   : > { %767 = vmatpush1.bf16.msra.mxu0 %v766_v12  ;;  %771 = vmatpush1.bf16.msra.mxu1 %v766_v12  ;;  %p979_p13 = pneg %p978_p6 }
  0xa2   : > { %p985_p5 = por %p984_p2, %p983_p11 }
  0xa3   : > { %420 = vbcast.lane.b32.xlu1 %v745_v13, 280  ;;  %412 = vbcast.lane.b32.xlu0 %v745_v13, 264 }
  0xa4   : > { %746 = vmatmul.mubr.msk.f32.vlgmr.msra.gmra.mrb[0].mxu0 %vm422_vm0, %v398_v14  ;;  %748 = vmatmul.mubr.msk.f32.vlgmr.msra.gmra.mrb[0].mxu1 %vm422_vm0, %v400_v15  ;;  %p986_p7 = pnand %p985_p5, %p979_p13 }
  0xa5   : > { %505 = vmatprep.mubr.f32.mxu0 %v1076_v0  ;;  %517 = vmatprep.mubr.f32.mxu1 %v1076_v0 }
  0xa8   : > { %747 = vmatmul.mubr.msk.f32.gmra.mrb[2].mxu0 %vm422_vm0, %v399_v16  ;;  %749 = vmatmul.mubr.msk.f32.gmra.mrb[2].mxu1 %vm422_vm0, %v401_v17 }
 0x111   : > { %v417_v18 = vpop.permute.xlu1 %416  ;;  %v409_v19 = vpop.permute.xlu0 %408 }
 0x115   : > { %v421_v32 = vpop.permute.xlu1 %420  ;;  %v413_v33 = vpop.permute.xlu0 %412 }
 0x177   : > { %v501_v20 = vpop.f32.mrb[0].mxu0  ;;  %v513_v22 = vpop.f32.mrb[0].mxu1 }
 0x178   : > { %v502_v24 = vadd.f32 %v501_v20, %v409_v19  ;;  %v514_v25 = vadd.f32 %v513_v22, %v417_v18  ;;  %v503_v26 = vpop.f32.mrb[1].mxu0  ;;  %v515_v28 = vpop.f32.mrb[1].mxu1 }
 0x179   : > { %v504_v30 = vadd.f32 %v503_v26, %v409_v19  ;;  %v516_v31 = vadd.f32 %v515_v28, %v417_v18 }
 0x17a   : > { %v532_v34 = vadd.f32 %v524_v21, %v502_v24  ;;  %v536_v35 = vadd.f32 %v528_v23, %v514_v25 }
 0x17b   : > { %v533_v36 = vadd.f32 %v525_v27, %v504_v30  ;;  %v537_v37 = vadd.f32 %v529_v29, %v516_v31  ;;  %v507_v38 = vpop.f32.mrb[2].mxu0  ;;  %v519_v40 = vpop.f32.mrb[2].mxu1 }
 0x17c   : > { %540 = vst [vmem:[%s1390_s27] sm:$0xff] %v532_v34  ;;  %544 = vst [vmem:[%s1390_s27 + $0x20] sm:$0xff] %v536_v35  ;;  %v508_v42 = vadd.f32 %v507_v38, %v413_v33  ;;  %v520_v43 = vadd.f32 %v519_v40, %v421_v32  ;;  %v509_v44 = vpop.f32.mrb[3].mxu0  ;;  %v521_v46 = vpop.f32.mrb[3].mxu1 }
 0x17d   : > { %541 = vst [vmem:[%s1390_s27 + $0x8] sm:$0xff] %v533_v36  ;;  %545 = vst [vmem:[%s1390_s27 + $0x28] sm:$0xff] %v537_v37  ;;  %v510_v48 = vadd.f32 %v509_v44, %v413_v33  ;;  %v522_v49 = vadd.f32 %v521_v46, %v421_v32 }
 0x17e   : > { %v534_v50 = vadd.f32 %v526_v39, %v508_v42  ;;  %v538_v51 = vadd.f32 %v530_v41, %v520_v43 }
 0x17f   : > { %v535_v52 = vadd.f32 %v527_v45, %v510_v48  ;;  %v539_v53 = vadd.f32 %v531_v47, %v522_v49 }
 0x180   : > { %542 = vst [vmem:[%s1390_s27 + $0x10] sm:$0xff] %v534_v50  ;;  %546 = vst [vmem:[%s1390_s27 + $0x30] sm:$0xff] %v538_v51 }
 0x181   : > { %543 = vst [vmem:[%s1390_s27 + $0x18] sm:$0xff] %v535_v52  ;;  %547 = vst [vmem:[%s1390_s27 + $0x38] sm:$0xff] %v539_v53 }
 0x182   : > { %989 = shalt.err (!%p986_p7)
}
 0x183   : > { %s990_s15 = scalar_lea.hbm %s1407_s13, 1024  ;;  %s994_s20 = scalar_lea.hbm %s1465_s5, 2048 }
 0x184   : > { %p991_p3 = scmp.ne.s32.totalorder %s1407_s13, %s990_s15  ;;  %p995_p12 = scmp.lt.u32.totalorder %s1407_s13, %s1465_s5 }
 0x185   : > { %p996_p4 = scmp.lt.u32.totalorder %s994_s20, %s990_s15  ;;  %p998_p0 = scmp.lt.u32.totalorder %s990_s15, %s1407_s13 }
 0x186   : > { %p992_p10 = pnand %p991_p3, %p1499_p1 }
 0x187   : > { %p997_p8 = por %p996_p4, %p995_p12 }
 0x188   : > { %p993_p9 = pneg %p992_p10 }
 0x189   : > { %p999_p6 = por %p998_p0, %p997_p8 }
 0x18b   : > { %p1000_p13 = pnand %p999_p6, %p993_p9 }
 0x18d   : > { %1003 = shalt.err (!%p1000_p13)
}
 0x18e   : > { %s1078_s18 = smov 256   ;;  %s1079_s10 = smov 16  }
 0x18f   : > { %780 = dma.vmem_to_hbm [thread:$0]  (%p1499_p1), %s1400_s7, 1024, %s1407_s13, %s549_s14, %s1078_s18, %s1078_s18, %s1079_s10  }
 0x190 PF: > { %s1500_s28 = sld [smem:[#allocation15_spill]]  ;;  %s1501_s24 = sld [smem:[#allocation20_spill]] }
 0x191   : > { %s1502_s30 = sld [smem:[#allocation17_spill]] }
 0x196   : > { %s579_s27 = sand.u32 1, %s1500_s28   ;;  %p1503_p11 = scmp.ne.s32.totalorder %s1501_s24, 0 }
 0x197   : > { %p1504_p2 = scmp.ge.s32.totalorder %s1502_s30, 2  ;;  %s580_s25 = scalar_lea.sflag [#allocation4], %s579_s27 }
 0x199   : > { %p796_p5 = pnand %p1504_p2, %p1503_p11 }
 0x19b   : > { %1041 = dma.done.wait (!%p796_p5), %s580_s25, 1024  }
 0x19c   : > { %1043 = vsyncadd (!%p796_p5), %s580_s25, 4294966272  ;;  %s27_s23 = sadd.s32 1, %s1502_s30   ;;  %s1505_s21 = sld [smem:[#allocation16_spill]] }
 0x19d   : > { %p24_p7 = scmp.ge.s32.totalorder %s27_s23, 4   ;;  %s1506_s20 = sld [smem:[#allocation19_spill]] }
 0x19e   : > { %s1507_s6 = sld [smem:[#allocation18_spill]]  ;;  %s1508_s18 = smov %s1050_s19 }
 0x19f   :  { %26 = sbr.rel (!%p24_p7) target bundleno = 12 (0xc), region = 122 }
 0x1a2   : > { %s1509_s19 = smov %s1505_s21  ;;  %s1510_s21 = smov %s1062_s22 }
 0x1a4   : > { %s1511_s22 = smov %s1507_s6 }
 0x1a6   :  { %585 = vsyncpa [#allocation3], 1 }
 0x1a7   :  { %587 = vsyncpa [#allocation3 + $0x1], 1 }
 0x1a8   :  { %588 = vsyncpa [#allocation6], 1 }
 0x1a9   :  { %590 = vsyncpa [#allocation6 + $0x1], 1 }
 0x1aa   :  { %591 = vsyncpa [#allocation9], 1 }
 0x1ab   :  { %593 = vsyncpa [#allocation9 + $0x1], 1 }
 0x1ac   :  { %594 = vsyncpa [#allocation4], 1 }
 0x1ad   :  { %596 = vsyncpa [#allocation4 + $0x1], 1 }

</bundles_post_ra>
